<compile_context>
chip_gen: v7x
topology: tpu7x:2x2x1
jax: 0.10.0
libtpu: 0.0.40
codegen_flags: <defaults>
</compile_context>

<pallas_src>
import math

import jax
import jax.numpy as jnp
import numpy as np
from jax.experimental import pallas as pl
from jax.experimental.pallas import tpu as pltpu

_LANE = 128
_PER_BUFFER_BYTES = 2 * 1024 * 1024      # ~2 MiB/tile: at HBM roofline already
_MIN_GRID_STEPS = 8                      # enough steps for prefetch overlap + 2-TC sharding
_VMEM_LIMIT_BYTES = 32 * 1024 * 1024     # overrides v5e's 16 MiB default, fits v7x's 64 MiB


def _spatial_dropout_kernel(x_ref, m_ref, o_ref):
    # x/o blocks: (1, tile_t, tile_h); mask block: (1, 1, tile_h), broadcast
    # over the sequence axis. Pure VPU multiply, hidden under the HBM stream.
    o_ref[...] = x_ref[...] * m_ref[...]


def _sublane(itemsize):
    return {1: 32, 2: 16}.get(itemsize, 8)


def _choose_tiles(B, T, H, itemsize):
    """Pick (tile_t, tile_h): ~2 MiB buffers, >= _MIN_GRID_STEPS grid steps."""
    sub = _sublane(itemsize)

    # H tiling is only legal when the feature dim is lane-dense (mult. of 128).
    # It guards against very large H blowing the VMEM budget at the minimal
    # T tile (4 live buffers must stay inside the 32 MiB scoped limit).
    tile_h = H
    if H % _LANE == 0:
        max_h = max(_LANE, (_PER_BUFFER_BYTES // (sub * itemsize)) // _LANE * _LANE)
        tile_h = min(H, max_h)
    # TODO(synk): if H is both enormous and not a multiple of 128 (and cannot
    # be lane-packed), the minimal tile may still exceed the VMEM limit; padding
    # H would add HBM traffic, so that pathological case is left untreated.

    rows = _PER_BUFFER_BYTES // max(1, tile_h * itemsize)
    tile_t = min(T, max(sub, (rows // sub) * sub))

    # Shrink tile_t until the grid has enough steps for DMA overlap and so
    # v7x's two TensorCores both get work (no-op on single-TC v5e/v6e).
    def n_steps(tt):
        return B * pl.cdiv(T, tt) * pl.cdiv(H, tile_h)

    while tile_t > sub and n_steps(tile_t) < _MIN_GRID_STEPS:
        tile_t = max(sub, ((tile_t // 2) // sub) * sub)
    return tile_t, tile_h


def spatial_dropout(x, key, drop=0.16, training=True, donate_input=False):
    """JAX/Pallas equivalent of SpatialDropout.forward with noise_shape=None."""
    if (not training) or drop == 0.0:
        return x
    if drop >= 1.0:
        return jnp.zeros_like(x)

    orig_shape = x.shape
    B, H = int(orig_shape[0]), int(orig_shape[-1])
    T = 1
    for d in orig_shape[1:-1]:
        T *= int(d)

    # Per-(batch, feature) inverted-dropout mask, rounded to the input dtype
    # (matches PyTorch: noise tensor has the inputs' dtype after bernoulli_/div_).
    keep = jax.random.bernoulli(key, p=1.0 - drop, shape=(B, 1, H))
    mask = jnp.where(keep, jnp.float32(1.0 / (1.0 - drop)),
                     jnp.float32(0.0)).astype(x.dtype)

    # Lane-pack the feature dim when H is not a multiple of 128: fold k
    # consecutive sequence rows into one lane-dense row of width k*H.
    # Row-major reshape maps (t, h) -> (t//k, (t%k)*H + h); tiling the mask k
    # times along the last dim reproduces the exact same per-element value, so
    # the multiply is bit-identical but uses unmasked, lane-dense loads/stores.
    k = _LANE // math.gcd(H, _LANE)
    if k > 1 and T % k == 0:
        Tp, Hp = T // k, k * H
        x3 = x.reshape(B, Tp, Hp)
        mask = jnp.tile(mask, (1, 1, k))
    else:
        # H is already a multiple of 128, or T isn't divisible by k (rare):
        # fall back to the straightforward (B, T, H) layout.
        Tp, Hp = T, H
        x3 = x.reshape(B, Tp, Hp)

    itemsize = jnp.dtype(x.dtype).itemsize
    tile_t, tile_h = _choose_tiles(B, Tp, Hp, itemsize)
    grid = (B, pl.cdiv(Tp, tile_t), pl.cdiv(Hp, tile_h))

    y3 = pl.pallas_call(
        _spatial_dropout_kernel,
        out_shape=jax.ShapeDtypeStruct((B, Tp, Hp), x.dtype),
        grid_spec=pltpu.PrefetchScalarGridSpec(
            num_scalar_prefetch=0,
            grid=grid,
            in_specs=[
                pl.BlockSpec((1, tile_t, tile_h), lambda b, t, h: (b, t, h)),
                pl.BlockSpec((1, 1, tile_h), lambda b, t, h: (b, 0, h)),
            ],
            out_specs=pl.BlockSpec((1, tile_t, tile_h), lambda b, t, h: (b, t, h)),
        ),
        compiler_params=pltpu.CompilerParams(
            dimension_semantics=("parallel", "parallel", "parallel"),
            vmem_limit_bytes=_VMEM_LIMIT_BYTES,
            # Let XLA fuse the tiny O(B*H) mask producer (RNG/where/cast) into
            # the pallas_call's mask fetch instead of separate tiny kernels.
            allow_input_fusion=[False, True],
        ),
        # Optional in-place execution when the caller donates x.
        input_output_aliases={0: 0} if donate_input else {},
    )(x3, mask)
    return y3.reshape(orig_shape)


if __name__ == "__main__":
    key = jax.random.PRNGKey(0)
    k1, k2, k3, k4, k5, k6 = jax.random.split(key, 6)
    drop = 0.16
    scale = 1.0 / (1.0 - drop)

    def check_columns(x, y, B, H, atol=1e-5):
        xn = np.asarray(x, dtype=np.float32).reshape(B, -1, H)
        yn = np.asarray(y, dtype=np.float32).reshape(B, -1, H)
        for b in range(B):
            for h in range(H):
                kept = np.allclose(yn[b, :, h], xn[b, :, h] * scale, atol=1e-2)
                dropped = np.allclose(yn[b, :, h], 0.0, atol=1e-6)
                assert kept or dropped, f"column ({b},{h}) violates spatial-dropout"

    # --- f32, H=32 (lane-packed path: k=4, T divisible by k) ---
    B, T, H = 2, 8, 32
    x = jax.random.normal(k1, (B, T, H), dtype=jnp.float32)
    y = jax.block_until_ready(spatial_dropout(x, k2, drop=drop, training=True))
    keep = jax.random.bernoulli(k2, p=1.0 - drop, shape=(B, 1, H))
    mask = jnp.where(keep, jnp.float32(scale), jnp.float32(0.0)).astype(x.dtype)
    assert np.allclose(np.asarray(y), np.asarray(x * mask), atol=1e-6)
    check_columns(x, y, B, H)

    # Eval mode passes input through untouched; drop==1 zeroes everything.
    y_eval = jax.block_until_ready(spatial_dropout(x, k2, drop=drop, training=False))
    assert np.allclose(np.asarray(y_eval), np.asarray(x))
    y_one = jax.block_until_ready(spatial_dropout(x, k2, drop=1.0, training=True))
    assert np.allclose(np.asarray(y_one), 0.0)

    # --- 4-D input (B, C, S, H): middle dims flattened, packed path ---
    x4 = jax.random.normal(k3, (2, 4, 8, 32), dtype=jnp.float32)
    y4 = jax.block_until_ready(spatial_dropout(x4, k4, drop=drop, training=True))
    keep4 = jax.random.bernoulli(k4, p=1.0 - drop, shape=(2, 1, 32))
    mask4 = jnp.where(keep4, jnp.float32(scale), jnp.float32(0.0)).astype(x4.dtype)
    ref4 = np.asarray(x4) * np.asarray(mask4).reshape(2, 1, 1, 32)
    assert np.allclose(np.asarray(y4), ref4, atol=1e-6)

    # --- bf16, lane-dense H=128 (no packing needed): exact match vs jnp ---
    x2 = jax.random.normal(k5, (2, 16, 128), dtype=jnp.bfloat16)
    y2 = jax.block_until_ready(spatial_dropout(x2, k6, drop=drop, training=True))
    keep2 = jax.random.bernoulli(k6, p=1.0 - drop, shape=(2, 1, 128))
    mask2 = jnp.where(keep2, jnp.float32(scale), jnp.float32(0.0)).astype(jnp.bfloat16)
    assert y2.dtype == jnp.bfloat16
    assert np.allclose(np.asarray(y2, dtype=np.float32),
                       np.asarray(x2 * mask2, dtype=np.float32))

    # --- fallback path: H=32, T=7 (not divisible by k=4 -> unpacked) ---
    kd3 = jax.random.fold_in(key, 11)
    kd4 = jax.random.fold_in(key, 13)
    x5 = jax.random.normal(kd3, (2, 7, 32), dtype=jnp.float32)
    y5 = jax.block_until_ready(spatial_dropout(x5, kd4, drop=drop, training=True))
    keep5 = jax.random.bernoulli(kd4, p=1.0 - drop, shape=(2, 1, 32))
    mask5 = jnp.where(keep5, jnp.float32(scale), jnp.float32(0.0)).astype(x5.dtype)
    assert np.allclose(np.asarray(y5), np.asarray(x5 * mask5), atol=1e-6)
    check_columns(x5, y5, 2, 32)

    print("KERNEL_OK")
</pallas_src>

<mosaic_0001>
module attributes {stable_mosaic.version = 11 : i64} {
  func.func @_spatial_dropout_kernel(%arg0: i32, %arg1: i32, %arg2: i32, %arg3: memref<1x2x128xf32, #tpu.memory_space<vmem>>, %arg4: memref<1x1x128xf32, #tpu.memory_space<vmem>>, %arg5: memref<1x2x128xf32, #tpu.memory_space<vmem>>) attributes {dimension_semantics = [#tpu.dimension_semantics<parallel>, #tpu.dimension_semantics<parallel>, #tpu.dimension_semantics<parallel>], iteration_bounds = array<i64: 2, 1, 1>, scalar_prefetch = 0 : i64, scratch_operands = 0 : i64, tpu.core_type = #tpu.core_type<tc>, window_params = [{transform_indices = @transform_0, window_bounds = array<i64: 1, 2, 128>}, {transform_indices = @transform_1, window_bounds = array<i64: 1, 1, 128>}, {transform_indices = @transform_2, window_bounds = array<i64: 1, 2, 128>}]} {
    %c0 = arith.constant 0 : index
    %c0_0 = arith.constant 0 : index
    %c0_1 = arith.constant 0 : index
    %0 = vector.load %arg3[%c0, %c0_0, %c0_1] : memref<1x2x128xf32, #tpu.memory_space<vmem>>, vector<1x2x128xf32>
    %c0_2 = arith.constant 0 : index
    %c0_3 = arith.constant 0 : index
    %c0_4 = arith.constant 0 : index
    %1 = vector.load %arg4[%c0_2, %c0_3, %c0_4] : memref<1x1x128xf32, #tpu.memory_space<vmem>>, vector<1x1x128xf32>
    %2 = vector.broadcast %1 : vector<1x1x128xf32> to vector<1x2x128xf32>
    %3 = arith.mulf %0, %2 : vector<1x2x128xf32>
    %c0_5 = arith.constant 0 : index
    %c0_6 = arith.constant 0 : index
    %c0_7 = arith.constant 0 : index
    %4 = vector.load %arg5[%c0_5, %c0_6, %c0_7] : memref<1x2x128xf32, #tpu.memory_space<vmem>>, vector<1x2x128xf32>
    tpu.vector_store %arg5[%c0_5, %c0_6, %c0_7], %3 {strides = array<i32>} : memref<1x2x128xf32, #tpu.memory_space<vmem>>, vector<1x2x128xf32>,
    return
  }
  func.func @transform_0(%arg0: i32, %arg1: i32, %arg2: i32) -> (i32, i32, i32) {
    %c0_i32 = arith.constant 0 : i32
    return %arg0, %arg1, %arg2 : i32, i32, i32
  }
  func.func @transform_1(%arg0: i32, %arg1: i32, %arg2: i32) -> (i32, i32, i32) {
    %c0_i32 = arith.constant 0 : i32
    %c0_i32_0 = arith.constant 0 : i32
    return %arg0, %c0_i32, %arg2 : i32, i32, i32
  }
  func.func @transform_2(%arg0: i32, %arg1: i32, %arg2: i32) -> (i32, i32, i32) {
    %c0_i32 = arith.constant 0 : i32
    return %arg0, %arg1, %arg2 : i32, i32, i32
  }
}

</mosaic_0001>

<bundles_post_ra>
// kernel: tpu_custom_call.1
= control target key start
LH: loop header
LB: loop body
LE: loop exit
PB: predicated region body
PF: predicated region fallthrough
CT: control target
= control target key end

     0   :  { %7 = vsyncpa [#allocation3], 0  ;;  %s720_s0 = inlined_call_operand.hbm [shape: f32[2,2,128], index: 0, kind: input, shape index: {}]   ;;  %s721_s1 = inlined_call_operand.vmem [shape: f32[2,1,128], index: 1, kind: input, shape index: {}]   ;;  %s722_s2 = inlined_call_operand.hbm [shape: f32[2,2,128], index: 2, kind: output, shape index: {}]  }
   0x1   :  { %9 = vsyncpa [#allocation3 + $0x1], 0 }
   0x2   :  { %10 = vsyncpa [#allocation4], 0 }
   0x3   :  { %12 = vsyncpa [#allocation4 + $0x1], 0  ;;  %s543_s9 = smov 0   ;;  %s545_s10 = smov 0  }
   0x4   :  { %s547_s11 = smov 0   ;;  %s549_s12 = smov 0  }
   0x5   :  { %s551_s13 = smov 0   ;;  %s553_s14 = smov 0  }
   0x6 LB: > { %s336_s15 = sadd.s32 4294967295, %s524_s14   ;;  %s337_s16 = sadd.s32 4294967294, %s524_s14   ;;  %s524_s14 = sphi %s553_s14, %s18_s14   ;;  %s520_s13 = sphi %s551_s13, %s738_s13   ;;  %s516_s12 = sphi %s549_s12, %s737_s12   ;;  %s512_s11 = sphi %s547_s11, %s736_s11   ;;  %s508_s10 = sphi %s545_s10, %s735_s10   ;;  %s504_s9 = sphi %s543_s9, %s734_s9  }
   0x7   : > { %s37_s17 = sadd.s32 1, %s520_s13  ;;  %s48_s18 = sadd.s32 1, %s512_s11 }
   0x8   : > { %p39_p0 = scmp.ge.s32.totalorder %s37_s17, 2  ;;  %p55_p1 = scmp.ne.s32.totalorder %s512_s11, %s508_s10 }
   0x9   : > { %p56_p2 = scmp.eq.s32.totalorder %s524_s14, 0  ;;  %p61_p3 = scmp.ne.s32.totalorder %s508_s10, %s504_s9 }
   0xa   : > { %s740_s17 = smov (%p39_p0, %s37_s17), 0  ;;  %p62_p5 = scmp.eq.s32.totalorder %s336_s15, 0 }
   0xb   : > { %p584_p4 = por %p56_p2, %p55_p1  ;;  %s41_s20 = ssub.s32 %s520_s13, %s740_s17 }
   0xc   : > { %p117_p6 = scmp.eq.s32.totalorder %s336_s15, 1  ;;  %p46_p7 = scmp.eq.s32.totalorder %s41_s20, 0 }
   0xd   : > { %p590_p8 = por %p62_p5, %p61_p3  ;;  %p123_p10 = scmp.eq.s32.totalorder %s337_s16, 1 }
   0xe   : > { %p594_p9 = por %p117_p6, %p55_p1  ;;  %p362_p13 = scmp.lt.s32.totalorder %s524_s14, 2 }
   0xf   : > { %s599_s23 = scalar_select %p46_p7, %s512_s11, %s48_s18  }
  0x10   : > { %s726_s22 = scalar_select %p594_p9, 1, 0 }
  0x11   : > { %p601_p11 = por %p123_p10, %p61_p3  ;;  %s143_s25 = sand.u32 1, %s512_s11  }
  0x12   : > { %s340_s26 = sshll.u32 %s143_s25, 1  ;;  %s341_s27 = sshll.u32 %s520_s13, 5 }
  0x13   : > { %s727_s24 = scalar_select %p601_p11, 1, 0 }
  0x14   : > { %s612_s30 = scalar_lea.hbm %s720_s0, %s341_s27  ;;  %s147_s3 = scalar_lea.vmem [#allocation2], %s340_s26 }
  0x15   : > { %s156_s4 = sshll.u32 %s147_s3, 4  ;;  %p618_p0 = pnand %p362_p13, %p584_p4  ;;  %s614_s4 = int_to_ptr.vmem [resolvable:$true] %s156_s4 }
  0x16   : > { %s144_s6 = scalar_lea.sflag [#allocation3], %s143_s25  ;;  %s412_s7 = scalar_lea.hbm %s612_s30, 32 }
  0x17   : > { %p413_p3 = scmp.ne.s32.totalorder %s612_s30, %s412_s7  ;;  %p414_p5 = pneg %p618_p0 }
  0x18   : > { %s417_s16 = scalar_lea.hbm %s720_s0, 64  ;;  %p418_p4 = scmp.lt.u32.totalorder %s612_s30, %s720_s0 }
  0x19   : > { %p415_p6 = pnand %p414_p5, %p413_p3  ;;  %p419_p10 = scmp.lt.u32.totalorder %s417_s16, %s412_s7 }
  0x1a   : > { %p421_p12 = scmp.lt.u32.totalorder %s412_s7, %s612_s30 }
  0x1b   : > { %p416_p7 = pneg %p415_p6  ;;  %p420_p13 = por %p419_p10, %p418_p4 }
  0x1d   : > { %p422_p1 = por %p421_p12, %p420_p13 }
  0x1f   : > { %p423_p2 = pnand %p422_p1, %p416_p7 }
  0x21   : > { %426 = shalt.err (!%p423_p2)
}
  0x22   : > { %s427_s20 = scalar_lea.vmem %s614_s4, 32  ;;  %s526_s25 = smov [#allocation2]  }
  0x23   : > { %p428_p3 = scmp.ne.s32.totalorder %s614_s4, %s427_s20  ;;  %s432_s26 = sshll.u32 %s526_s25, 4  ;;  %s433_s26 = int_to_ptr.vmem [resolvable:$false] %s432_s26 }
  0x24   : > { %s434_s27 = scalar_lea.vmem %s433_s26, 64  ;;  %p435_p9 = scmp.lt.s32.totalorder %s614_s4, %s433_s26 }
  0x25   : > { %p430_p6 = pnand %p428_p3, %p414_p5  ;;  %p436_p4 = scmp.lt.s32.totalorder %s434_s27, %s427_s20 }
  0x27   : > { %p431_p11 = pneg %p430_p6  ;;  %p437_p10 = por %p436_p4, %p435_p9 }
  0x29   : > { %p438_p12 = pnand %p437_p10, %p431_p11 }
  0x2b   : > { %441 = shalt.err (!%p438_p12)
}
  0x2c   : > { %357 = dma.hbm_to_vmem [thread:$0]  (!%p618_p0), %s612_s30, 32, %s614_s4, %s144_s6  }
  0x2d   : > { %p729_p1 = scmp.lt.s32.totalorder %s524_s14, 3  ;;  %p730_p2 = scmp.ge.s32.totalorder %s524_s14, 1 }
  0x2f   : > { %p171_p5 = pnand %p730_p2, %p729_p1 }
  0x30   : > { %s654_s28 = sand.u32 (!%p171_p5), 1, %s508_s10  }
  0x31   : > { %174 = sbr.rel (%p171_p5) target bundleno = 85 (0x55), region = 28  ;;  %s343_s29 = sshll.u32 (!%p171_p5), %s654_s28, 1 }
  0x32   : > { %s177_s3 = scalar_lea.sflag (!%p171_p5), [#allocation3], %s654_s28  ;;  %s180_s7 = scalar_lea.vmem (!%p171_p5), [#allocation2], %s343_s29 }
  0x38   : > { %495 = dma.done.wait (%p590_p8), %s177_s3, 32  }
  0x39   : > { %497 = vsyncadd (%p590_p8), %s177_s3, 4294967264  ;;  %p207_p9 = scmp.lt.s32.totalorder %s516_s12, 1  ;;  %s206_s8 = scalar_lea.vmem [#allocation5], %s343_s29  ;;  %v213_v0 = vld [vmem:[%s180_s7] sm:$0x3] }
  0x3a   : > { %s239_s15 = sshll.u32 %s206_s8, 4  ;;  %s347_s16 = sshll.u32 %s516_s12, 5  ;;  %s668_s15 = int_to_ptr.vmem [resolvable:$true] %s239_s15 }
  0x3b   : > { %s208_s30 = scalar_select %p207_p9, %s516_s12, 1 }
  0x3c   : > { %s673_s19 = scalar_lea.hbm %s722_s2, %s347_s16  ;;  %s224_s20 = scalar_lea.sflag [#allocation4], %s654_s28 }
  0x3d   : > { %s212_s6 = scalar_lea.vmem %s721_s1, %s208_s30  ;;  %s442_s25 = scalar_lea.vmem %s668_s15, 32 }
  0x3e   : > { %v345_v1 = vld [vmem:[%s212_s6] ss:$0 sm:$0xff]  ;;  %p443_p8 = scmp.ne.s32.totalorder %s668_s15, %s442_s25  ;;  %p731_p11 = scmp.ne.s32.totalorder %s726_s22, 0 }
  0x3f   : > { %v221_v2 = vmul.f32 %v345_v1, %v213_v0  ;;  %s527_s12 = smov [#allocation5]  }
  0x40   : > { %p444_p0 = pnand %p443_p8, %p731_p11  ;;  %s446_s26 = sshll.u32 %s527_s12, 4  ;;  %s447_s26 = int_to_ptr.vmem [resolvable:$false] %s446_s26 }
  0x41   : > { %222 = vst [vmem:[%s206_s8] sm:$0x3] %v221_v2  ;;  %s448_s27 = scalar_lea.vmem %s447_s26, 64  ;;  %p449_p13 = scmp.lt.s32.totalorder %s668_s15, %s447_s26 }
  0x42   : > { %p445_p7 = pneg %p444_p0  ;;  %p450_p3 = scmp.lt.s32.totalorder %s448_s27, %s442_s25 }
  0x44   : > { %p451_p6 = por %p450_p3, %p449_p13 }
  0x46   : > { %p452_p4 = pnand %p451_p6, %p445_p7 }
  0x48   : > { %455 = shalt.err (!%p452_p4)
}
  0x49   : > { %s456_s28 = scalar_lea.hbm %s673_s19, 32  ;;  %s460_s7 = scalar_lea.hbm %s722_s2, 64 }
  0x4a   : > { %p457_p10 = scmp.ne.s32.totalorder %s673_s19, %s456_s28  ;;  %p461_p2 = scmp.lt.u32.totalorder %s673_s19, %s722_s2 }
  0x4b   : > { %p462_p5 = scmp.lt.u32.totalorder %s460_s7, %s456_s28  ;;  %p464_p8 = scmp.lt.u32.totalorder %s456_s28, %s673_s19 }
  0x4c   : > { %p458_p12 = pnand %p457_p10, %p731_p11 }
  0x4d   : > { %p463_p9 = por %p462_p5, %p461_p2 }
  0x4e   : > { %p459_p1 = pneg %p458_p12 }
  0x4f   : > { %p465_p0 = por %p464_p8, %p463_p9 }
  0x51   : > { %p466_p7 = pnand %p465_p0, %p459_p1 }
  0x53   : > { %469 = shalt.err (!%p466_p7)
}
  0x54   : > { %352 = dma.vmem_to_hbm [thread:$0]  (%p731_p11), %s668_s15, 32, %s673_s19, %s224_s20  }
  0x55 PF: > { %s251_s5 = sand.u32 1, %s504_s9   ;;  %p732_p13 = scmp.ne.s32.totalorder %s727_s24, 0 }
  0x56   : > { %p733_p3 = scmp.ge.s32.totalorder %s524_s14, 2  ;;  %s252_s6 = scalar_lea.sflag [#allocation4], %s251_s5 }
  0x58   : > { %p359_p6 = pnand %p733_p3, %p732_p13 }
  0x5a   : > { %499 = dma.done.wait (!%p359_p6), %s252_s6, 32  }
  0x5b   : > { %501 = vsyncadd (!%p359_p6), %s252_s6, 4294967264  ;;  %s18_s14 = sadd.s32 1, %s524_s14   ;;  %s734_s9 = smov %s508_s10 }
  0x5c   : > { %p15_p4 = scmp.ge.s32.totalorder %s18_s14, 4   ;;  %s735_s10 = smov %s512_s11 }
  0x5d   : > { %s736_s11 = smov %s599_s23  ;;  %s737_s12 = smov %s520_s13 }
  0x5e   : > { %s738_s13 = smov %s740_s17  ;;  %17 = sbr.rel (!%p15_p4) target bundleno = 6 (0x6), region = 76 }
  0x65   :  { %257 = vsyncpa [#allocation3], 1 }
  0x66   :  { %259 = vsyncpa [#allocation3 + $0x1], 1 }
  0x67   :  { %260 = vsyncpa [#allocation4], 1 }
  0x68   :  { %262 = vsyncpa [#allocation4 + $0x1], 1 }

</bundles_post_ra>
